<compile_context>
chip_gen: v6e
topology: v6e:2x2x1
jax: 0.10.0
libtpu: 0.0.40
codegen_flags: <defaults>
</compile_context>

<pallas_src>
import jax
import jax.numpy as jnp
from jax.experimental import pallas as pl
from jax.experimental.pallas import tpu as pltpu

_LANE = 128


def _round_up(x, m):
    return ((x + m - 1) // m) * m


def _rlat_kernel(e1_ref, m1_ref, e2_ref, m2_ref,
                 wp_ref, bp_ref, wa_ref, wb_ref, bh_ref, out_ref):
    # e*_ref : [TB, S, E] bf16   token embeddings (native width, no lane pad)
    # m*_ref : [TB, S, 1] bf16   mask pre-normalized by 1/count in the wrapper
    # wp_ref : [E, E] bf16,  bp_ref: [1, E] f32          (pooler)
    # wa/wb  : [E, Tpad] bf16, bh_ref: [1, Tpad] f32     (fused heads, split-K)
    # out_ref: [TB, Tpad] f32
    tb = e1_ref.shape[0]

    # --- stand-in encoder: masked mean over S --------------------------------
    # bf16 multiply on the VPU (lane-splat broadcast of the [TB,S,1] mask),
    # f32 accumulation for the sublane-axis sum.
    h1 = jnp.sum((e1_ref[...] * m1_ref[...]).astype(jnp.float32), axis=1)  # [TB, E]
    h2 = jnp.sum((e2_ref[...] * m2_ref[...]).astype(jnp.float32), axis=1)  # [TB, E]
    h = jnp.concatenate([h1, h2], axis=0).astype(jnp.bfloat16)             # [2*TB, E]

    # --- BERT-style pooler: one stacked MXU matmul + tanh (EUP) --------------
    pooled = jnp.tanh(
        jnp.dot(h, wp_ref[...], preferred_element_type=jnp.float32) + bp_ref[...]
    )                                                                      # [2*TB, E] f32

    # --- fused classification heads (split-K, single lane-dense store) -------
    p1 = pooled[:tb].astype(jnp.bfloat16)   # pooled1 [TB, E]
    p2 = pooled[tb:].astype(jnp.bfloat16)   # pooled2 [TB, E]
    out_ref[...] = (
        jnp.dot(p1, wa_ref[...], preferred_element_type=jnp.float32)
        + jnp.dot(p2, wb_ref[...], preferred_element_type=jnp.float32)
        + bh_ref[...]
    )


def _pick_batch_tile(B, S, E, Tpad, vmem_budget_bytes=40 << 20):
    """Largest multiple-of-8 batch tile that fits the VMEM budget (<= 512)."""
    # double-buffered per-TB-row bytes: 2 bf16 emb blocks, 2 bf16 mask blocks,
    # 1 f32 out block (all x2 for the BlockSpec pipeline).
    per_row = 2 * (2 * S * E * 2) + 2 * (2 * S * 2) + 2 * (Tpad * 4)
    weights = 2 * (E * E * 2 + E * 4 + 2 * E * Tpad * 2 + Tpad * 4)
    tb = max(8, ((vmem_budget_bytes - weights) // per_row) // 8 * 8)
    tb = min(tb, 512)
    b8 = _round_up(B, 8)
    tb = min(tb, b8)
    # keep >= 2 grid steps when the batch allows (feeds both v7x TensorCores)
    if tb >= b8 and b8 >= 16:
        tb = _round_up(b8 // 2, 8)
    return int(tb)


def model_rlat_forward(emb1, emb2, mask1, mask2, params, *, batch_tile=None):
    """emb1/emb2: [B, S, E] token embeddings; mask1/mask2: [B, S] float masks.

    Returns (center [B, Tc], relation [B, Tr]) in float32.
    """
    B, S, E = emb1.shape
    Tc = params["wc"].shape[1]
    Tr = params["wr"].shape[1]
    T = Tc + Tr
    Tpad = _round_up(T, _LANE)

    TB = batch_tile if batch_tile is not None else _pick_batch_tile(B, S, E, Tpad)
    Bpad = _round_up(B, TB)
    cdt = jnp.bfloat16

    # embeddings at native width E; bf16 at the boundary (no-op cast when the
    # embedding table is already stored in bf16, as init_params does)
    e1 = emb1 if emb1.dtype == cdt else emb1.astype(cdt)
    e2 = emb2 if emb2.dtype == cdt else emb2.astype(cdt)

    # fold 1/count into the mask on the tiny [B, S] arrays; ship as [B, S, 1]
    def prep_mask(m):
        m = m.astype(jnp.float32)
        denom = jnp.maximum(jnp.sum(m, axis=-1, keepdims=True), 1.0)
        return (m / denom)[..., None].astype(cdt)

    m1 = prep_mask(mask1)
    m2 = prep_mask(mask2)

    if Bpad != B:  # no-op at production batch sizes that are multiples of TB
        pad_b = ((0, Bpad - B), (0, 0), (0, 0))
        e1 = jnp.pad(e1, pad_b)
        e2 = jnp.pad(e2, pad_b)
        m1 = jnp.pad(m1, pad_b)
        m2 = jnp.pad(m2, pad_b)

    # --- pooler weights (bf16 operands, f32 bias) -----------------------------
    wp = params["wp"].astype(cdt)                                   # [E, E]
    bp = params["bp"].astype(jnp.float32)                           # [1, E]

    # --- fuse the two heads: cat([p1,p2]) @ [wc|wr] == p1 @ W_top + p2 @ W_bot
    wc, wr = params["wc"], params["wr"]                             # [2E,Tc],[2E,Tr]
    w_top = jnp.concatenate([wc[:E], wr[:E]], axis=1)               # [E, T]
    w_bot = jnp.concatenate([wc[E:], wr[E:]], axis=1)               # [E, T]
    wa = jnp.pad(w_top, ((0, 0), (0, Tpad - T))).astype(cdt)        # [E, Tpad]
    wb = jnp.pad(w_bot, ((0, 0), (0, Tpad - T))).astype(cdt)        # [E, Tpad]
    bh = jnp.pad(
        jnp.concatenate([params["bc"], params["br"]], axis=1).astype(jnp.float32),
        ((0, 0), (0, Tpad - T)),
    )                                                               # [1, Tpad]

    resident = lambda i: (0, 0)

    # explicit VMEM budget: above v5e/v6e scoped defaults, below v7x physical
    per_row = 2 * (2 * S * E * 2) + 2 * (2 * S * 2) + 2 * (Tpad * 4)
    weights_bytes = 2 * (E * E * 2 + E * 4 + 2 * E * Tpad * 2 + Tpad * 4)
    vmem_limit = int(min(48 << 20,
                         max(16 << 20, TB * per_row + weights_bytes + (2 << 20))))

    cost = pl.CostEstimate(
        flops=int(2 * 2 * Bpad * S * E              # masked mean
                  + 2 * (2 * Bpad) * E * E          # pooler matmul
                  + 2 * 2 * Bpad * E * Tpad),       # fused heads
        transcendentals=int(2 * Bpad * E),          # tanh
        bytes_accessed=int(2 * Bpad * S * E * 2     # embeddings (bf16)
                           + 2 * Bpad * S * 2       # masks (bf16)
                           + Bpad * Tpad * 4        # logits out (f32)
                           + E * E * 2 + 2 * E * Tpad * 2 + (E + Tpad) * 4),
    )

    logits = pl.pallas_call(
        _rlat_kernel,
        out_shape=jax.ShapeDtypeStruct((Bpad, Tpad), jnp.float32),
        grid_spec=pltpu.PrefetchScalarGridSpec(
            num_scalar_prefetch=0,
            grid=(Bpad // TB,),
            in_specs=[
                pl.BlockSpec((TB, S, E), lambda i: (i, 0, 0)),   # emb1
                pl.BlockSpec((TB, S, 1), lambda i: (i, 0, 0)),   # mask1 (normalized)
                pl.BlockSpec((TB, S, E), lambda i: (i, 0, 0)),   # emb2
                pl.BlockSpec((TB, S, 1), lambda i: (i, 0, 0)),   # mask2 (normalized)
                pl.BlockSpec((E, E), resident),                  # wp
                pl.BlockSpec((1, E), resident),                  # bp
                pl.BlockSpec((E, Tpad), resident),               # wa (heads, top K)
                pl.BlockSpec((E, Tpad), resident),               # wb (heads, bottom K)
                pl.BlockSpec((1, Tpad), resident),               # bh
            ],
            out_specs=pl.BlockSpec((TB, Tpad), lambda i: (i, 0)),
        ),
        compiler_params=pltpu.CompilerParams(
            dimension_semantics=("parallel",),
            vmem_limit_bytes=vmem_limit,
        ),
        cost_estimate=cost,
    )(e1, m1, e2, m2, wp, bp, wa, wb, bh)

    # slice the real rows / columns back out (lane-dense inside the kernel)
    center = logits[:B, :Tc]
    relation = logits[:B, Tc:Tc + Tr]
    return center, relation


def init_params(key, embedding_dim, tagset_size_center, tagset_size_relation, vocab_size):
    E = embedding_dim
    keys = jax.random.split(key, 6)
    scale = 0.02
    return {
        # embedding table (stand-in for BERT word embeddings) — stored bf16 so
        # the gather yields bf16 directly (no extra HBM cast pass).
        "emb_table": (scale * jax.random.normal(keys[0], (vocab_size, E), jnp.float32)
                      ).astype(jnp.bfloat16),
        # pooler (stand-in for BERT pooler dense layer), stored as [in, out]
        "wp": scale * jax.random.normal(keys[1], (E, E), jnp.float32),
        "bp": jnp.zeros((1, E), jnp.float32),
        # hidden2tag_center: nn.Linear(2E, Tc)  -> stored as [2E, Tc]
        "wc": scale * jax.random.normal(keys[2], (2 * E, tagset_size_center), jnp.float32),
        "bc": 0.01 * jnp.ones((1, tagset_size_center), jnp.float32),
        # hidden2tag_relation: nn.Linear(2E, Tr) -> stored as [2E, Tr]
        "wr": scale * jax.random.normal(keys[3], (2 * E, tagset_size_relation), jnp.float32),
        "br": 0.01 * jnp.ones((1, tagset_size_relation), jnp.float32),
    }


if __name__ == "__main__":
    # small, deterministic shapes
    B, S, E = 2, 8, 32           # batch, seq, embedding_dim
    Tc, Tr = 8, 4                # tagset_size_center, tagset_size_relation
    VOCAB = 64

    key = jax.random.PRNGKey(0)
    kp, k1, k2, km1, km2 = jax.random.split(key, 5)

    params = init_params(kp, E, Tc, Tr, VOCAB)

    input_ids1 = jax.random.randint(k1, (B, S), 0, VOCAB, dtype=jnp.int32)
    input_ids2 = jax.random.randint(k2, (B, S), 0, VOCAB, dtype=jnp.int32)
    input_mask1 = (jax.random.uniform(km1, (B, S)) > 0.2).astype(jnp.float32)
    input_mask2 = (jax.random.uniform(km2, (B, S)) > 0.2).astype(jnp.float32)

    # glue: embedding lookup stays in plain JAX (bf16 table -> bf16 gather)
    # TODO(synk): fuse this gather into the kernel via PrefetchScalarGridSpec.
    emb1 = params["emb_table"][input_ids1]   # [B, S, E] bf16
    emb2 = params["emb_table"][input_ids2]   # [B, S, E] bf16

    center, relation = model_rlat_forward(emb1, emb2, input_mask1, input_mask2, params)
    jax.block_until_ready((center, relation))

    assert center.shape == (B, Tc) and relation.shape == (B, Tr)
    assert center.dtype == jnp.float32 and relation.dtype == jnp.float32
    print("KERNEL_OK")
</pallas_src>

<mosaic_0001>
module attributes {stable_mosaic.version = 11 : i64} {
  func.func @_rlat_kernel(%arg0: i32, %arg1: memref<8x8x32xbf16, #tpu.memory_space<vmem>>, %arg2: memref<8x8x1xbf16, #tpu.memory_space<vmem>>, %arg3: memref<8x8x32xbf16, #tpu.memory_space<vmem>>, %arg4: memref<8x8x1xbf16, #tpu.memory_space<vmem>>, %arg5: memref<32x32xbf16, #tpu.memory_space<vmem>>, %arg6: memref<1x32xf32, #tpu.memory_space<vmem>>, %arg7: memref<32x128xbf16, #tpu.memory_space<vmem>>, %arg8: memref<32x128xbf16, #tpu.memory_space<vmem>>, %arg9: memref<1x128xf32, #tpu.memory_space<vmem>>, %arg10: memref<8x128xf32, #tpu.memory_space<vmem>>) attributes {dimension_semantics = [#tpu.dimension_semantics<parallel>], iteration_bounds = array<i64: 1>, scalar_prefetch = 0 : i64, scratch_operands = 0 : i64, tpu.core_type = #tpu.core_type<tc>, window_params = [{transform_indices = @transform_0, window_bounds = array<i64: 8, 8, 32>}, {transform_indices = @transform_1, window_bounds = array<i64: 8, 8, 1>}, {transform_indices = @transform_2, window_bounds = array<i64: 8, 8, 32>}, {transform_indices = @transform_3, window_bounds = array<i64: 8, 8, 1>}, {pipeline_mode = #tpu.pipeline_mode<synchronous>, transform_indices = @transform_4, window_bounds = array<i64: 32, 32>}, {pipeline_mode = #tpu.pipeline_mode<synchronous>, transform_indices = @transform_5, window_bounds = array<i64: 1, 32>}, {pipeline_mode = #tpu.pipeline_mode<synchronous>, transform_indices = @transform_6, window_bounds = array<i64: 32, 128>}, {pipeline_mode = #tpu.pipeline_mode<synchronous>, transform_indices = @transform_7, window_bounds = array<i64: 32, 128>}, {pipeline_mode = #tpu.pipeline_mode<synchronous>, transform_indices = @transform_8, window_bounds = array<i64: 1, 128>}, {transform_indices = @transform_9, window_bounds = array<i64: 8, 128>}]} {
    %c0 = arith.constant 0 : index
    %c0_0 = arith.constant 0 : index
    %c0_1 = arith.constant 0 : index
    %0 = vector.load %arg1[%c0, %c0_0, %c0_1] : memref<8x8x32xbf16, #tpu.memory_space<vmem>>, vector<8x8x32xbf16>
    %c0_2 = arith.constant 0 : index
    %c0_3 = arith.constant 0 : index
    %c0_4 = arith.constant 0 : index
    %1 = vector.load %arg2[%c0_2, %c0_3, %c0_4] : memref<8x8x1xbf16, #tpu.memory_space<vmem>>, vector<8x8x1xbf16>
    %2 = vector.broadcast %1 : vector<8x8x1xbf16> to vector<8x8x32xbf16>
    %3 = arith.mulf %0, %2 : vector<8x8x32xbf16>
    %4 = arith.extf %3 : vector<8x8x32xbf16> to vector<8x8x32xf32>
    %cst = arith.constant dense<0.000000e+00> : vector<8x32xf32>
    %5 = vector.multi_reduction <add>, %4, %cst [1] : vector<8x8x32xf32> to vector<8x32xf32>
    %c0_5 = arith.constant 0 : index
    %c0_6 = arith.constant 0 : index
    %c0_7 = arith.constant 0 : index
    %6 = vector.load %arg3[%c0_5, %c0_6, %c0_7] : memref<8x8x32xbf16, #tpu.memory_space<vmem>>, vector<8x8x32xbf16>
    %c0_8 = arith.constant 0 : index
    %c0_9 = arith.constant 0 : index
    %c0_10 = arith.constant 0 : index
    %7 = vector.load %arg4[%c0_8, %c0_9, %c0_10] : memref<8x8x1xbf16, #tpu.memory_space<vmem>>, vector<8x8x1xbf16>
    %8 = vector.broadcast %7 : vector<8x8x1xbf16> to vector<8x8x32xbf16>
    %9 = arith.mulf %6, %8 : vector<8x8x32xbf16>
    %10 = arith.extf %9 : vector<8x8x32xbf16> to vector<8x8x32xf32>
    %cst_11 = arith.constant dense<0.000000e+00> : vector<8x32xf32>
    %11 = vector.multi_reduction <add>, %10, %cst_11 [1] : vector<8x8x32xf32> to vector<8x32xf32>
    %12 = tpu.concatenate %5, %11 in 0 : vector<8x32xf32>, vector<8x32xf32> -> vector<16x32xf32>
    %13 = arith.truncf %12 : vector<16x32xf32> to vector<16x32xbf16>
    %c0_12 = arith.constant 0 : index
    %c0_13 = arith.constant 0 : index
    %14 = vector.load %arg5[%c0_12, %c0_13] : memref<32x32xbf16, #tpu.memory_space<vmem>>, vector<32x32xbf16>
    %cst_14 = arith.constant dense<0.000000e+00> : vector<16x32xf32>
    %15 = tpu.matmul %13, %14, %cst_14 {dimension_numbers = #tpu.dot_dimension_numbers<[1], [0], [0], [1], [0, 0, 1, 1], [], []>} : vector<16x32xbf16>, vector<32x32xbf16>, vector<16x32xf32> -> vector<16x32xf32>
    %c0_15 = arith.constant 0 : index
    %c0_16 = arith.constant 0 : index
    %16 = vector.load %arg6[%c0_15, %c0_16] : memref<1x32xf32, #tpu.memory_space<vmem>>, vector<1x32xf32>
    %17 = vector.broadcast %16 : vector<1x32xf32> to vector<16x32xf32>
    %18 = arith.addf %15, %17 : vector<16x32xf32>
    %19 = math.tanh %18 : vector<16x32xf32>
    %20 = vector.extract_strided_slice %19 {offsets = [0, 0], sizes = [8, 32], strides = [1, 1]} : vector<16x32xf32> to vector<8x32xf32>
    %21 = arith.truncf %20 : vector<8x32xf32> to vector<8x32xbf16>
    %22 = vector.extract_strided_slice %19 {offsets = [8, 0], sizes = [8, 32], strides = [1, 1]} : vector<16x32xf32> to vector<8x32xf32>
    %23 = arith.truncf %22 : vector<8x32xf32> to vector<8x32xbf16>
    %c0_17 = arith.constant 0 : index
    %c0_18 = arith.constant 0 : index
    %24 = vector.load %arg7[%c0_17, %c0_18] : memref<32x128xbf16, #tpu.memory_space<vmem>>, vector<32x128xbf16>
    %cst_19 = arith.constant dense<0.000000e+00> : vector<8x128xf32>
    %25 = tpu.matmul %21, %24, %cst_19 {dimension_numbers = #tpu.dot_dimension_numbers<[1], [0], [0], [1], [0, 0, 1, 1], [], []>} : vector<8x32xbf16>, vector<32x128xbf16>, vector<8x128xf32> -> vector<8x128xf32>
    %c0_20 = arith.constant 0 : index
    %c0_21 = arith.constant 0 : index
    %26 = vector.load %arg8[%c0_20, %c0_21] : memref<32x128xbf16, #tpu.memory_space<vmem>>, vector<32x128xbf16>
    %cst_22 = arith.constant dense<0.000000e+00> : vector<8x128xf32>
    %27 = tpu.matmul %23, %26, %cst_22 {dimension_numbers = #tpu.dot_dimension_numbers<[1], [0], [0], [1], [0, 0, 1, 1], [], []>} : vector<8x32xbf16>, vector<32x128xbf16>, vector<8x128xf32> -> vector<8x128xf32>
    %28 = arith.addf %25, %27 : vector<8x128xf32>
    %c0_23 = arith.constant 0 : index
    %c0_24 = arith.constant 0 : index
    %29 = vector.load %arg9[%c0_23, %c0_24] : memref<1x128xf32, #tpu.memory_space<vmem>>, vector<1x128xf32>
    %30 = vector.broadcast %29 : vector<1x128xf32> to vector<8x128xf32>
    %31 = arith.addf %28, %30 : vector<8x128xf32>
    %c0_25 = arith.constant 0 : index
    %c0_26 = arith.constant 0 : index
    %32 = vector.load %arg10[%c0_25, %c0_26] : memref<8x128xf32, #tpu.memory_space<vmem>>, vector<8x128xf32>
    tpu.vector_store %arg10[%c0_25, %c0_26], %31 {strides = array<i32>} : memref<8x128xf32, #tpu.memory_space<vmem>>, vector<8x128xf32>,
    return
  }
  func.func @transform_0(%arg0: i32) -> (i32, i32, i32) {
    %c0_i32 = arith.constant 0 : i32
    %c0_i32_0 = arith.constant 0 : i32
    %c0_i32_1 = arith.constant 0 : i32
    return %arg0, %c0_i32, %c0_i32_0 : i32, i32, i32
  }
  func.func @transform_1(%arg0: i32) -> (i32, i32, i32) {
    %c0_i32 = arith.constant 0 : i32
    %c0_i32_0 = arith.constant 0 : i32
    %c0_i32_1 = arith.constant 0 : i32
    return %arg0, %c0_i32, %c0_i32_0 : i32, i32, i32
  }
  func.func @transform_2(%arg0: i32) -> (i32, i32, i32) {
    %c0_i32 = arith.constant 0 : i32
    %c0_i32_0 = arith.constant 0 : i32
    %c0_i32_1 = arith.constant 0 : i32
    return %arg0, %c0_i32, %c0_i32_0 : i32, i32, i32
  }
  func.func @transform_3(%arg0: i32) -> (i32, i32, i32) {
    %c0_i32 = arith.constant 0 : i32
    %c0_i32_0 = arith.constant 0 : i32
    %c0_i32_1 = arith.constant 0 : i32
    return %arg0, %c0_i32, %c0_i32_0 : i32, i32, i32
  }
  func.func @transform_4(%arg0: i32) -> (i32, i32) {
    %c0_i32 = arith.constant 0 : i32
    %c0_i32_0 = arith.constant 0 : i32
    %c0_i32_1 = arith.constant 0 : i32
    return %c0_i32, %c0_i32_0 : i32, i32
  }
  func.func @transform_5(%arg0: i32) -> (i32, i32) {
    %c0_i32 = arith.constant 0 : i32
    %c0_i32_0 = arith.constant 0 : i32
    %c0_i32_1 = arith.constant 0 : i32
    return %c0_i32, %c0_i32_0 : i32, i32
  }
  func.func @transform_6(%arg0: i32) -> (i32, i32) {
    %c0_i32 = arith.constant 0 : i32
    %c0_i32_0 = arith.constant 0 : i32
    %c0_i32_1 = arith.constant 0 : i32
    return %c0_i32, %c0_i32_0 : i32, i32
  }
  func.func @transform_7(%arg0: i32) -> (i32, i32) {
    %c0_i32 = arith.constant 0 : i32
    %c0_i32_0 = arith.constant 0 : i32
    %c0_i32_1 = arith.constant 0 : i32
    return %c0_i32, %c0_i32_0 : i32, i32
  }
  func.func @transform_8(%arg0: i32) -> (i32, i32) {
    %c0_i32 = arith.constant 0 : i32
    %c0_i32_0 = arith.constant 0 : i32
    %c0_i32_1 = arith.constant 0 : i32
    return %c0_i32, %c0_i32_0 : i32, i32
  }
  func.func @transform_9(%arg0: i32) -> (i32, i32) {
    %c0_i32 = arith.constant 0 : i32
    %c0_i32_0 = arith.constant 0 : i32
    return %arg0, %c0_i32 : i32, i32
  }
}

</mosaic_0001>

<bundles_post_ra>
// kernel: tpu_custom_call.1
= control target key start
LH: loop header
LB: loop body
LE: loop exit
PB: predicated region body
PF: predicated region fallthrough
CT: control target
= control target key end

     0   :  { %14 = vsyncpa [#allocation3], 0  ;;  %s1067_s0 = inlined_call_operand.vmem [shape: bf16[8,8,32], index: 0, kind: input, shape index: {}]   ;;  %s1068_s1 = inlined_call_operand.vmem [shape: bf16[8,8,1], index: 1, kind: input, shape index: {}]   ;;  %s1069_s2 = inlined_call_operand.vmem [shape: bf16[8,8,32], index: 2, kind: input, shape index: {}]   ;;  %s1070_s3 = inlined_call_operand.vmem [shape: bf16[8,8,1], index: 3, kind: input, shape index: {}]   ;;  %s1071_s4 = inlined_call_operand.hbm [shape: bf16[32,32], index: 4, kind: input, shape index: {}]   ;;  %s1072_s5 = inlined_call_operand.vmem [shape: f32[1,32], index: 5, kind: input, shape index: {}]   ;;  %s1073_s6 = inlined_call_operand.vmem [shape: bf16[32,128], index: 6, kind: input, shape index: {}]   ;;  %s1074_s7 = inlined_call_operand.hbm [shape: bf16[32,128], index: 7, kind: input, shape index: {}]   ;;  %s1075_s8 = inlined_call_operand.vmem [shape: f32[1,128], index: 8, kind: input, shape index: {}]   ;;  %s1076_s9 = inlined_call_operand.hbm [shape: f32[8,128], index: 9, kind: output, shape index: {}]  }
   0x1   :  { %15 = vsyncpa [#allocation6], 0 }
   0x2   :  { %16 = vsyncpa [#allocation4], 0  ;;  %s816_s30 = smov [#allocation2]  }
   0x3   :  { %s30_s10 = sshll.u32 %s816_s30, 4  ;;  %s31_s10 = int_to_ptr.vmem [resolvable:$true] %s30_s10 }
   0x4   :  { %s758_s11 = scalar_lea.vmem %s31_s10, 256  ;;  %p763_p1 = scmp.lt.s32.totalorder %s31_s10, %s31_s10 }
   0x5   :  { %p759_p0 = scmp.ne.s32.totalorder %s31_s10, %s758_s11  ;;  %p764_p2 = scmp.lt.s32.totalorder %s758_s11, %s758_s11 }
   0x7   :  { %p765_p3 = por %p764_p2, %p763_p1 }
   0x9   :  { %p766_p4 = pnand %p765_p3, %p759_p0 }
   0xb   :  { %769 = shalt.err (!%p766_p4)
}
   0xc   :  { %s817_s12 = smov 64   ;;  %s818_s13 = smov 4  }
   0xd   :  { %36 = dma.hbm_to_vmem [thread:$0]  %s1071_s4, 256, %s31_s10, [#allocation3], %s817_s12, %s817_s12, %s818_s13  }
   0xe   :  { %s819_s16 = smov [#allocation5]  }
   0xf   :  { %s46_s17 = sshll.u32 %s819_s16, 4  ;;  %s47_s17 = int_to_ptr.vmem [resolvable:$true] %s46_s17 }
  0x10   :  { %s778_s18 = scalar_lea.vmem %s47_s17, 256  ;;  %p783_p6 = scmp.lt.s32.totalorder %s47_s17, %s47_s17 }
  0x11   :  { %p779_p5 = scmp.ne.s32.totalorder %s47_s17, %s778_s18  ;;  %p784_p7 = scmp.lt.s32.totalorder %s778_s18, %s778_s18 }
  0x13   :  { %p785_p8 = por %p784_p7, %p783_p6 }
  0x15   :  { %p786_p9 = pnand %p785_p8, %p779_p5 }
  0x17   :  { %789 = shalt.err (!%p786_p9)
}
  0x18   :  { %52 = dma.hbm_to_vmem [thread:$0]  %s1074_s7, 256, %s47_s17, [#allocation6], %s817_s12, %s817_s12, %s818_s13  }
  0x19   :  { %810 = dma.done.wait [#allocation3], 256  }
  0x1a   :  { %811 = vsyncadd [#allocation3], 4294967040 }
  0x1b   :  { %812 = dma.done.wait [#allocation6], 256  }
  0x1c   :  { %813 = vsyncadd [#allocation6], 4294967040  ;;  %v820_v0 = vmov 0   ;;  %v255_v1 = vld [vmem:[%s1070_s3] sm:$0xf]  ;;  %v740_v17 = vld [vmem:[#allocation2 + $0x8] sm:$0xff]   ;;  %v86_v22 = vlaneseq }
  0x1d   :  { %739 = vset.pattern.permute.xlu1 %v820_v0  ;;  %738 = vset.pattern.permute.xlu0 %v820_v0  ;;  %v70_v2 = vld [vmem:[%s1068_s1] sm:$0xf]  ;;  %v256_v3 = vld [vmem:[%s1070_s3 + $0x4] sm:$0xf]  ;;  %v257_v5 = vld [vmem:[%s1070_s3 + $0x8] sm:$0xf] }
  0x1e   :  { %265 = vperm.xlu1 %739, %v255_v1   ;;  %80 = vperm.xlu0 %738, %v70_v2   ;;  %v71_v4 = vld [vmem:[%s1068_s1 + $0x4] sm:$0xf]  ;;  %v72_v6 = vld [vmem:[%s1068_s1 + $0x8] sm:$0xf]  ;;  %v258_v7 = vld [vmem:[%s1070_s3 + $0xc] sm:$0xf] }
  0x1f   :  { %v73_v8 = vld [vmem:[%s1068_s1 + $0xc] sm:$0xf]  ;;  %v259_v9 = vld [vmem:[%s1070_s3 + $0x10] sm:$0xf]  ;;  %v260_v11 = vld [vmem:[%s1070_s3 + $0x14] sm:$0xf] }
  0x20   :  { %v74_v10 = vld [vmem:[%s1068_s1 + $0x10] sm:$0xf]  ;;  %v75_v12 = vld [vmem:[%s1068_s1 + $0x14] sm:$0xf]  ;;  %v261_v13 = vld [vmem:[%s1070_s3 + $0x18] sm:$0xf] }
  0x21   :  { %v76_v14 = vld [vmem:[%s1068_s1 + $0x18] sm:$0xf]  ;;  %v262_v15 = vld [vmem:[%s1070_s3 + $0x1c] sm:$0xf]  ;;  %v821_v18 = vmov 0.0   ;;  %v741_v19 = vld [vmem:[#allocation2] sm:$0xff]  }
  0x22   :  { %277 = vperm.xlu1 %739, %v256_v3   ;;  %92 = vperm.xlu0 %738, %v71_v4   ;;  %v77_v16 = vld [vmem:[%s1068_s1 + $0x1c] sm:$0xf]  ;;  %vm822_vm0 = vmmov 0   ;;  %v823_v20 = vmov 839922192   ;;  %v87_v24 = vshrl.u32 %v86_v22, 7 }
  0x23   :  { %705 = vmatprep.subr.bf16.mxu0 %v821_v18  ;;  %713 = vmatprep.subr.bf16.mxu1 %v821_v18  ;;  %v84_v21 = vunpack.c.l.s4 %v823_v20  ;;  %v247_v27 = vld [vmem:[%s1069_s2] sm:$0xf]  ;;  %vm190_vm1 = vcmask 261120   ;;  %v248_v35 = vld [vmem:[%s1069_s2 + $0x4] sm:$0xf]  ;;  %vm439_vm2 = vcmask 1041409  }
  0x24   :  { %706 = vmatpush3.bf16.msra.mxu0 %v740_v17  ;;  %709 = vmatprep.mubr.msk.bf16.mxu0 %vm822_vm0, %v821_v18  ;;  %v62_v29 = vld [vmem:[%s1067_s0] sm:$0xf]  ;;  %v63_v37 = vld [vmem:[%s1067_s0 + $0x4] sm:$0xf]  ;;  %v249_v49 = vld [vmem:[%s1069_s2 + $0x8] sm:$0xf] }
  0x25   :  { %707 = vmatprep.subr.bf16.mxu0 %v821_v18  ;;  %717 = vmatprep.mubr.msk.bf16.mxu1 %vm822_vm0, %v821_v18  ;;  %v85_v23 = vunpack.c.0.s8 %v84_v21  ;;  %v64_v51 = vld [vmem:[%s1067_s0 + $0x8] sm:$0xf]  ;;  %v250_v1 = vld [vmem:[%s1069_s2 + $0xc] sm:$0xf]  ;;  %vm441_vm3 = vcmask 1042434   ;;  %vm443_vm4 = vcmask 1043459  }
  0x26   :  { %289 = vperm.xlu1 %739, %v257_v5   ;;  %104 = vperm.xlu0 %738, %v72_v6   ;;  %v65_v3 = vld [vmem:[%s1067_s0 + $0xc] sm:$0xf]  ;;  %vm445_vm5 = vcmask 1044484   ;;  %vm447_vm6 = vcmask 1045509   ;;  %vm449_vm7 = vcmask 1046534   ;;  %vm451_vm8 = vcmask 1047559  }
  0x27   :  { %v937_v25 = vsub.s32 %v85_v23, %v87_v24  ;;  %s824_s16 = smov [#allocation7]  }
  0x28   :  { %708 = vmatpush3.bf16.msra.mxu0 %v741_v19  ;;  %s675_s17 = sshll.u32 %s824_s16, 4  ;;  %s676_s17 = int_to_ptr.vmem [resolvable:$true] %s675_s17 }
  0x29   :  { %721 = vmatprep.subr.bf16.mxu0 %v821_v18  ;;  %s790_s18 = scalar_lea.vmem %s676_s17, 128  ;;  %p795_p11 = scmp.lt.s32.totalorder %s676_s17, %s676_s17 }
  0x2a   :  { %301 = vperm.xlu1 %739, %v258_v7   ;;  %116 = vperm.xlu0 %738, %v73_v8   ;;  %p791_p10 = scmp.ne.s32.totalorder %s676_s17, %s790_s18  ;;  %p796_p12 = scmp.lt.s32.totalorder %s790_s18, %s790_s18 }
  0x2c   :  { %p797_p13 = por %p796_p12, %p795_p11 }
  0x2e   :  { %313 = vperm.xlu1 %739, %v259_v9   ;;  %128 = vperm.xlu0 %738, %v74_v10   ;;  %p798_p0 = pnand %p797_p13, %p791_p10 }
  0x32   :  { %325 = vperm.xlu1 %739, %v260_v11   ;;  %140 = vperm.xlu0 %738, %v75_v12  }
  0x36   :  { %337 = vperm.xlu1 %739, %v261_v13   ;;  %152 = vperm.xlu0 %738, %v76_v14  }
  0x3a   :  { %349 = vperm.xlu1 %739, %v262_v15   ;;  %164 = vperm.xlu0 %738, %v77_v16  }
  0x99   :  { %v266_v26 = vpop.permute.xlu1 %265  ;;  %v81_v28 = vpop.permute.xlu0 %80 }
  0x9a   :  { %v274_v30 = vrot.slane %v266_v26, %v937_v25  ;;  %v89_v31 = vrot.slane %v81_v28, %v937_v25 }
  0x9c   :  { %v359_v32 = vmul.bf16 %v274_v30, %v247_v27  ;;  %v174_v33 = vmul.bf16 %v89_v31, %v62_v29  ;;  %v251_v30 = vld [vmem:[%s1069_s2 + $0x10] sm:$0xf] }
  0x9d   :  { %v278_v34 = vpop.permute.xlu1 %277  ;;  %v93_v36 = vpop.permute.xlu0 %92  ;;  %v66_v31 = vld [vmem:[%s1067_s0 + $0x10] sm:$0xf] }
  0x9e   :  { %v367_v38 = vunpack.c.l.bf16 %v359_v32  ;;  %v182_v39 = vunpack.c.l.bf16 %v174_v33  ;;  %v286_v40 = vrot.slane %v278_v34, %v937_v25  ;;  %v101_v41 = vrot.slane %v93_v36, %v937_v25 }
  0xa0   :  { %v375_v42 = vsel %vm190_vm1, %v367_v38, 0.0  ;;  %v191_v43 = vsel %vm190_vm1, %v182_v39, 0.0  ;;  %v360_v44 = vmul.bf16 %v286_v40, %v248_v35  ;;  %v175_v45 = vmul.bf16 %v101_v41, %v63_v37 }
  0xa1   :  { %v376_v46 = vrot.slane %v375_v42, 4  ;;  %v192_v47 = vrot.slane %v191_v43, 4  ;;  %v290_v48 = vpop.permute.xlu1 %289  ;;  %v105_v50 = vpop.permute.xlu0 %104 }
  0xa2   :  { %v368_v52 = vunpack.c.l.bf16 %v360_v44  ;;  %v183_v53 = vunpack.c.l.bf16 %v175_v45  ;;  %v298_v54 = vrot.slane %v290_v48, %v937_v25  ;;  %v113_v55 = vrot.slane %v105_v50, %v937_v25 }
  0xa3   :  { %v377_v60 = vadd.f32 %v376_v46, %v375_v42  ;;  %v193_v61 = vadd.f32 %v192_v47, %v191_v43 }
  0xa4   :  { %v382_v56 = vsel %vm190_vm1, %v368_v52, 0.0  ;;  %v198_v57 = vsel %vm190_vm1, %v183_v53, 0.0  ;;  %v361_v58 = vmul.bf16 %v298_v54, %v249_v49  ;;  %v176_v59 = vmul.bf16 %v113_v55, %v64_v51  ;;  %v252_v52 = vld [vmem:[%s1069_s2 + $0x14] sm:$0xf] }
  0xa5   :  { %v383_v62 = vrot.slane %v382_v56, 4  ;;  %v199_v63 = vrot.slane %v198_v57, 4  ;;  %v302_v0 = vpop.permute.xlu1 %301  ;;  %v117_v2 = vpop.permute.xlu0 %116  ;;  %v378_v14 = vrot.slane %v377_v60, 2  ;;  %v194_v15 = vrot.slane %v193_v61, 2  ;;  %v67_v54 = vld [vmem:[%s1067_s0 + $0x14] sm:$0xf] }
  0xa6   :  { %v369_v4 = vunpack.c.l.bf16 %v361_v58  ;;  %v184_v5 = vunpack.c.l.bf16 %v176_v59  ;;  %v310_v6 = vrot.slane %v302_v0, %v937_v25  ;;  %v125_v7 = vrot.slane %v117_v2, %v937_v25 }
  0xa7   :  { %v384_v8 = vadd.f32 %v383_v62, %v382_v56  ;;  %v200_v9 = vadd.f32 %v199_v63, %v198_v57  ;;  %v379_v28 = vadd.f32 %v378_v14, %v377_v60  ;;  %v195_v29 = vadd.f32 %v194_v15, %v193_v61 }
  0xa8   :  { %v389_v10 = vsel %vm190_vm1, %v369_v4, 0.0  ;;  %v205_v11 = vsel %vm190_vm1, %v184_v5, 0.0  ;;  %v362_v12 = vmul.bf16 %v310_v6, %v250_v1  ;;  %v177_v13 = vmul.bf16 %v125_v7, %v65_v3 }
  0xa9   :  { %v385_v16 = vrot.slane %v384_v8, 2  ;;  %v201_v17 = vrot.slane %v200_v9, 2  ;;  %v314_v19 = vpop.permute.xlu1 %313  ;;  %v129_v20 = vpop.permute.xlu0 %128  ;;  %v390_v23 = vrot.slane %v389_v10, 4  ;;  %v206_v24 = vrot.slane %v205_v11, 4 }
  0xaa   :  { %v370_v21 = vunpack.c.l.bf16 %v362_v12  ;;  %v185_v22 = vunpack.c.l.bf16 %v177_v13  ;;  %v322_v36 = vrot.slane %v314_v19, %v937_v25  ;;  %v137_v37 = vrot.slane %v129_v20, %v937_v25 }
  0xab   :  { %v386_v26 = vadd.f32 %v385_v16, %v384_v8  ;;  %v202_v27 = vadd.f32 %v201_v17, %v200_v9  ;;  %v391_v38 = vadd.f32 %v390_v23, %v389_v10  ;;  %v207_v39 = vadd.f32 %v206_v24, %v205_v11  ;;  %v253_v10 = vld [vmem:[%s1069_s2 + $0x18] sm:$0xf] }
  0xac   :  { %v396_v34 = vsel %vm190_vm1, %v370_v21, 0.0  ;;  %v212_v35 = vsel %vm190_vm1, %v185_v22, 0.0  ;;  %v363_v42 = vmul.bf16 %v322_v36, %v251_v30  ;;  %v178_v43 = vmul.bf16 %v137_v37, %v66_v31  ;;  %v68_v11 = vld [vmem:[%s1067_s0 + $0x18] sm:$0xf] }
  0xad   :  { %v326_v32 = vpop.permute.xlu1 %325  ;;  %v141_v33 = vpop.permute.xlu0 %140  ;;  %v387_v40 = vrot.slane %v386_v26, 1  ;;  %v203_v41 = vrot.slane %v202_v27, 1  ;;  %v397_v44 = vrot.slane %v396_v34, 4  ;;  %v213_v45 = vrot.slane %v212_v35, 4 }
  0xae   :  { %v380_v46 = vrot.slane %v379_v28, 1  ;;  %v196_v47 = vrot.slane %v195_v29, 1  ;;  %v371_v48 = vunpack.c.l.bf16 %v363_v42  ;;  %v186_v49 = vunpack.c.l.bf16 %v178_v43 }
  0xaf   :  { %v392_v50 = vrot.slane %v391_v38, 2  ;;  %v208_v51 = vrot.slane %v207_v39, 2  ;;  %v334_v53 = vrot.slane %v326_v32, %v937_v25  ;;  %v149_v55 = vrot.slane %v141_v33, %v937_v25  ;;  %v69_v33 = vld [vmem:[%s1067_s0 + $0x1c] sm:$0xf] }
  0xb0   :  { %v388_v58 = vadd.f32 %v387_v40, %v386_v26  ;;  %v204_v59 = vadd.f32 %v203_v41, %v202_v27  ;;  %v403_v60 = vsel %vm190_vm1, %v371_v48, 0.0  ;;  %v219_v61 = vsel %vm190_vm1, %v186_v49, 0.0 }
  0xb1   :  { %v338_v56 = vpop.permute.xlu1 %337  ;;  %v153_v57 = vpop.permute.xlu0 %152  ;;  %v398_v62 = vadd.f32 %v397_v44, %v396_v34  ;;  %v214_v63 = vadd.f32 %v213_v45, %v212_v35  ;;  %v404_v0 = vrot.slane %v403_v60, 4  ;;  %v220_v1 = vrot.slane %v219_v61, 4 }
  0xb2   :  { %v381_v2 = vadd.f32 %v380_v46, %v379_v28  ;;  %v197_v3 = vadd.f32 %v196_v47, %v195_v29  ;;  %v364_v4 = vmul.bf16 %v334_v53, %v252_v52  ;;  %v179_v5 = vmul.bf16 %v149_v55, %v67_v54  ;;  %v254_v28 = vld [vmem:[%s1069_s2 + $0x1c] sm:$0xf] }
  0xb3   :  { %v997_v6 = vadd.f32 %v392_v50, %v391_v38  ;;  %v999_v7 = vadd.f32 %v208_v51, %v207_v39  ;;  %v405_v8 = vadd.f32 %v404_v0, %v403_v60  ;;  %v221_v9 = vadd.f32 %v220_v1, %v219_v61 }
  0xb4   :  { %v372_v12 = vunpack.c.l.bf16 %v364_v4  ;;  %v187_v13 = vunpack.c.l.bf16 %v179_v5  ;;  %v346_v14 = vrot.slane %v338_v56, %v937_v25  ;;  %v161_v15 = vrot.slane %v153_v57, %v937_v25 }
  0xb5   :  { %v1010_v16 = vsel %vm439_vm2, %v388_v58, %v381_v2  ;;  %v1013_v17 = vsel %vm439_vm2, %v204_v59, %v197_v3  ;;  %v399_v19 = vrot.slane %v398_v62, 2  ;;  %v215_v20 = vrot.slane %v214_v63, 2  ;;  %v350_v21 = vpop.permute.xlu1 %349  ;;  %v165_v22 = vpop.permute.xlu0 %164 }
  0xb6   :  { %v410_v23 = vsel %vm190_vm1, %v372_v12, 0.0  ;;  %v226_v24 = vsel %vm190_vm1, %v187_v13, 0.0  ;;  %v365_v26 = vmul.bf16 %v346_v14, %v253_v10  ;;  %v180_v27 = vmul.bf16 %v161_v15, %v68_v11 }
  0xb7   :  { %v406_v29 = vrot.slane %v405_v8, 2  ;;  %v222_v30 = vrot.slane %v221_v9, 2  ;;  %v411_v31 = vrot.slane %v410_v23, 4  ;;  %v227_v32 = vrot.slane %v226_v24, 4 }
  0xb8   :  { %v373_v34 = vunpack.c.l.bf16 %v365_v26  ;;  %v188_v35 = vunpack.c.l.bf16 %v180_v27  ;;  %v358_v36 = vrot.slane %v350_v21, %v937_v25  ;;  %v173_v37 = vrot.slane %v165_v22, %v937_v25 }
  0xb9   :  { %v400_v38 = vadd.f32 %v399_v19, %v398_v62  ;;  %v216_v39 = vadd.f32 %v215_v20, %v214_v63  ;;  %v412_v40 = vadd.f32 %v411_v31, %v410_v23  ;;  %v228_v41 = vadd.f32 %v227_v32, %v226_v24 }
  0xba   :  { %v417_v42 = vsel %vm190_vm1, %v373_v34, 0.0  ;;  %v233_v43 = vsel %vm190_vm1, %v188_v35, 0.0  ;;  %v366_v44 = vmul.bf16 %v358_v36, %v254_v28  ;;  %v181_v45 = vmul.bf16 %v173_v37, %v69_v33 }
  0xbb   :  { %v407_v46 = vadd.f32 %v406_v29, %v405_v8  ;;  %v223_v47 = vadd.f32 %v222_v30, %v221_v9  ;;  %v413_v48 = vrot.slane %v412_v40, 2  ;;  %v229_v49 = vrot.slane %v228_v41, 2 }
  0xbc   :  { %v418_v50 = vrot.slane %v417_v42, 4  ;;  %v234_v51 = vrot.slane %v233_v43, 4  ;;  %v374_v52 = vunpack.c.l.bf16 %v366_v44  ;;  %v189_v25 = vunpack.c.l.bf16 %v181_v45 }
  0xbd   :  { %v394_v53 = vrot.slane %v997_v6, 1  ;;  %v210_v54 = vrot.slane %v999_v7, 1  ;;  %v414_v55 = vadd.f32 %v413_v48, %v412_v40  ;;  %v230_v56 = vadd.f32 %v229_v49, %v228_v41  ;;  %v744_v48 = vld [vmem:[%s1073_s6] sm:$0xff]   ;;  %v745_v49 = vld [vmem:[#allocation5] sm:$0xff]  }
  0xbe   :  { %v419_v57 = vadd.f32 %v418_v50, %v417_v42  ;;  %v235_v58 = vadd.f32 %v234_v51, %v233_v43  ;;  %v424_v59 = vsel %vm190_vm1, %v374_v52, 0.0  ;;  %v240_v60 = vsel %vm190_vm1, %v189_v25, 0.0  ;;  %v685_v50 = vld [vmem:[%s1072_s5] ss:$0 sm:$0xff] }
  0xbf   :  { %v401_v61 = vrot.slane %v400_v38, 1  ;;  %v217_v62 = vrot.slane %v216_v39, 1  ;;  %v425_v63 = vrot.slane %v424_v59, 4  ;;  %v241_v0 = vrot.slane %v240_v60, 4 }
  0xc0   :  { %v408_v1 = vrot.slane %v407_v46, 1  ;;  %v224_v2 = vrot.slane %v223_v47, 1  ;;  %v420_v3 = vrot.slane %v419_v57, 2  ;;  %v236_v4 = vrot.slane %v235_v58, 2 }
  0xc1   :  { %v415_v5 = vrot.slane %v414_v55, 1  ;;  %v231_v8 = vrot.slane %v230_v56, 1  ;;  %v426_v9 = vadd.f32 %v425_v63, %v424_v59  ;;  %v242_v10 = vadd.f32 %v241_v0, %v240_v60 }
  0xc2   :  { %v395_v11 = vadd.f32 %v394_v53, %v997_v6  ;;  %v211_v12 = vadd.f32 %v210_v54, %v999_v7  ;;  %v421_v13 = vadd.f32 %v420_v3, %v419_v57  ;;  %v237_v14 = vadd.f32 %v236_v4, %v235_v58 }
  0xc3   :  { %v402_v15 = vadd.f32 %v401_v61, %v400_v38  ;;  %v218_v19 = vadd.f32 %v217_v62, %v216_v39  ;;  %v427_v20 = vrot.slane %v426_v9, 2  ;;  %v243_v21 = vrot.slane %v242_v10, 2  ;;  %v695_v62 = vld [vmem:[%s1075_s8] ss:$0 sm:$0xff] }
  0xc4   :  { %v409_v22 = vadd.f32 %v408_v1, %v407_v46  ;;  %v225_v23 = vadd.f32 %v224_v2, %v223_v47  ;;  %v422_v24 = vrot.slane %v421_v13, 1  ;;  %v238_v26 = vrot.slane %v237_v14, 1  ;;  %v742_v46 = vld [vmem:[%s1073_s6 + $0x8] sm:$0xff]   ;;  %v743_v47 = vld [vmem:[#allocation5 + $0x8] sm:$0xff]  }
  0xc5   :  { %v416_v27 = vadd.f32 %v415_v5, %v414_v55  ;;  %v232_v28 = vadd.f32 %v231_v8, %v230_v56  ;;  %v428_v29 = vadd.f32 %v427_v20, %v426_v9  ;;  %v244_v30 = vadd.f32 %v243_v21, %v242_v10  ;;  %714 = vmatpush3.bf16.msra.mxu1 %v743_v47 }
  0xc6   :  { %v463_v31 = vsel %vm441_vm3, %v395_v11, %v1010_v16  ;;  %v442_v6 = vsel %vm441_vm3, %v211_v12, %v1013_v17  ;;  %v423_v7 = vadd.f32 %v422_v24, %v421_v13  ;;  %v239_v32 = vadd.f32 %v238_v26, %v237_v14  ;;  %715 = vmatprep.subr.bf16.mxu1 %v821_v18 }
  0xc7   :  { %v464_v33 = vsel %vm443_vm4, %v402_v15, %v463_v31  ;;  %v444_v34 = vsel %vm443_vm4, %v218_v19, %v442_v6  ;;  %v429_v35 = vrot.slane %v428_v29, 1  ;;  %v245_v36 = vrot.slane %v244_v30, 1 }
  0xc8   :  { %v465_v37 = vsel %vm445_vm5, %v409_v22, %v464_v33  ;;  %v446_v38 = vsel %vm445_vm5, %v225_v23, %v444_v34 }
  0xc9   :  { %v430_v39 = vadd.f32 %v429_v35, %v428_v29  ;;  %v246_v40 = vadd.f32 %v245_v36, %v244_v30  ;;  %v448_v16 = vsel %vm447_vm6, %v232_v28, %v446_v38  ;;  %v466_v41 = vsel %vm447_vm6, %v416_v27, %v465_v37  ;;  %716 = vmatpush3.bf16.msra.mxu1 %v745_v49 }
  0xca   :  { %v450_v17 = vsel %vm449_vm7, %v239_v32, %v448_v16  ;;  %v467_v42 = vsel %vm449_vm7, %v423_v7, %v466_v41 }
  0xcb   :  { %v452_v43 = vsel %vm451_vm8, %v246_v40, %v450_v17  ;;  %v468_v44 = vsel %vm451_vm8, %v430_v39, %v467_v42 }
  0xcc   :  { %v470_v45 = vpack.c.bf16 %v468_v44, %v452_v43 }
  0xce   :  { %710 = vmatmul.mubr.msk.bf16.vlgmr.msra.gmra.mxu0 %vm190_vm1, %v470_v45 }
  0xcf   :  { %725 = vmatprep.mubr.msk.bf16.mxu0 %vm822_vm0, %v821_v18  ;;  %722 = vmatpush3.bf16.msra.mxu0 %v742_v46 }
  0xd0   :  { %723 = vmatprep.subr.bf16.mxu0 %v821_v18 }
  0xd3   :  { %724 = vmatpush3.bf16.msra.mxu0 %v744_v48 }
 0x18e   :  { %v531_v51 = vpop.f32.mrf.mxu0 }
 0x18f   :  { %v532_v52 = vadd.f32 %v685_v50, %v531_v51 }
 0x190   :  { %v711_v25 = vpop.f32.mrf.mxu0 }
 0x191   :  { %746 = vtanh.f32 %v532_v52 }
 0x192   :  { %v534_v53 = vpop.f32.mrf.mxu0 }
 0x193   :  { %v535_v54 = vadd.f32 %v685_v50, %v534_v53 }
 0x194   :  { %v712_v55 = vpop.f32.mrf.mxu0 }
 0x195   :  { %748 = vtanh.f32 %v535_v54 }
 0x19e   :  { %v747_v56 = vpop.eup %746 }
 0x19f   :  { %v540_v57 = vpack.c.bf16 %v747_v56, %v747_v56 }
 0x1a1   :  { %726 = vmatmul.mubr.msk.bf16.vlgmr.msra.gmra.mxu0 %vm190_vm1, %v540_v57 }
 0x1a2   :  { %v749_v58 = vpop.eup %748 }
 0x1a3   :  { %v541_v18 = vpack.c.bf16 %v749_v58, %v749_v58 }
 0x1a5   :  { %718 = vmatmul.mubr.msk.bf16.vlgmr.msra.gmra.mxu1 %vm190_vm1, %v541_v18 }
 0x261   :  { %v654_v59 = vpop.f32.mrf.mxu0 }
 0x263   :  { %v727_v60 = vpop.f32.mrf.mxu0 }
 0x265   :  { %v599_v61 = vpop.f32.mrf.mxu1  ;;  %v657_v63 = vpop.f32.mrf.mxu0 }
 0x266   :  { %v655_v0 = vadd.f32 %v654_v59, %v599_v61 }
 0x267   :  { %v719_v1 = vpop.f32.mrf.mxu1  ;;  %v728_v2 = vpop.f32.mrf.mxu0 }
 0x268   :  { %v667_v3 = vadd.f32 %v695_v62, %v655_v0 }
 0x269   :  { %v602_v4 = vpop.f32.mrf.mxu1 }
 0x26a   :  { %668 = vst [vmem:[#allocation7] sm:$0xff] %v667_v3 }
 0x26b   :  { %v720_v5 = vpop.f32.mrf.mxu1 }
 0x26c   :  { %801 = shalt.err (!%p798_p0)
}
 0x26d   :  { %678 = dma.vmem_to_hbm [thread:$0]  %s676_s17, 128, %s1076_s9, [#allocation4]  }
 0x26e   :  { %814 = dma.done.wait [#allocation4], 128  }
 0x26f   :  { %815 = vsyncadd [#allocation4], 4294967168 }
 0x270   :  { %682 = vsyncpa [#allocation3], 1 }
 0x271   :  { %683 = vsyncpa [#allocation6], 1 }
 0x272   :  { %684 = vsyncpa [#allocation4], 1 }

</bundles_post_ra>
